<compile_context>
chip_gen: v7x
topology: tpu7x:2x2x1
jax: 0.10.0
libtpu: 0.0.40
codegen_flags: <defaults>
</compile_context>

<pallas_src>
import functools

import jax
import jax.numpy as jnp
import numpy as np
from jax.experimental import pallas as pl
from jax.experimental.pallas import tpu as pltpu

# ---------------- model hyper-parameters (static) ----------------
IN_FEATURES = 32
INNER_SIZE = 32
N_INNER_LAYERS = 2
OUT_FEATURES = 16
NEG_SLOPE = 0.01  # nn.LeakyReLU default


def _leaky_relu(x):
    # identical to where(x>0, x, a*x) for 0 < a < 1, but only mul+max on the VPU
    return jnp.maximum(x, NEG_SLOPE * x)


def _cdiv(a, b):
    return -(-a // b)


def _round_up(a, b):
    return _cdiv(a, b) * b


def _num_tensorcores():
    """Best-effort TensorCore-per-chip count (v4/v5p/v7x have 2, v5e/v6e have 1)."""
    try:
        dk = jax.devices()[0].device_kind.lower()
        if any(t in dk for t in ("v7", "tpu7", "7x", "v4", "v5p")):
            return 2
    except Exception:
        pass
    return 1


def _pick_batch_tile(n, tb):
    """Batch tile (lanes): multiple of 128, large enough to amortize the
    per-grid-step fixed cost. Single-TC chips get one big tile; dual-TC chips
    get an even number of grid steps so both cores do equal work."""
    tb = max(128, (int(tb) // 128) * 128)
    n128 = _round_up(n, 128)
    tb = min(tb, n128)
    if _num_tensorcores() >= 2 and n128 >= 2 * 128:
        steps = max(2, _round_up(_cdiv(n128, tb), 2))
        tb = _round_up(_cdiv(n128, steps), 128)
    return tb


def mlskipper_kernel(
    x_ref,        # (TB, IN_FEATURES)        f32   batch-major, straight from HBM
    enc_w_ref,    # (L, INNER, INNER)        bf16  layer 0 = fused up+enc0 weight
    dec_w_ref,    # (L, INNER, 2*INNER)      bf16  acts on concat([h, skip])
    b32_ref,      # (2L, INNER, 1)           f32   [enc biases (fused first); dec biases]
    head_w_ref,   # (OUT, INNER)             bf16
    head_b_ref,   # (OUT, 1)                 f32
    o_ref,        # (TB, OUT)                x.dtype, batch-major
):
    bf16 = jnp.bfloat16

    # Feature-major layout: batch on the 128-lane axis. The transpose runs on
    # the XLU, which is otherwise idle in this kernel.
    h = x_ref[...].T.astype(bf16)                                   # (IN, TB)

    # Encoder (layer 0 already contains the folded `up` projection).
    skips = []
    for i in range(N_INNER_LAYERS):
        h = (jnp.dot(enc_w_ref[i], h.astype(bf16),
                     preferred_element_type=jnp.float32)
             + b32_ref[i])
        h = _leaky_relu(h)
        skips.append(h.astype(bf16))

    # Decoder: concat([h, skip], feature axis) -> one K=2*INNER matmul.
    for i in range(N_INNER_LAYERS):
        s = skips[-(i + 1)]
        cat = jnp.concatenate([h.astype(bf16), s], axis=0)          # (2*INNER, TB)
        h = (jnp.dot(dec_w_ref[i], cat, preferred_element_type=jnp.float32)
             + b32_ref[N_INNER_LAYERS + i])
        h = _leaky_relu(h)

    # Head (final_activation is None in the default config).
    out = (jnp.dot(head_w_ref[...], h.astype(bf16),
                   preferred_element_type=jnp.float32)
           + head_b_ref[...])                                       # (OUT, TB)

    # Back to batch-major for a direct HBM writeback (no wrapper transpose).
    o_ref[...] = out.T.astype(o_ref.dtype)


def prepare_params(params):
    """One-time host-side weight prep: fold `up` into enc_0 (exact, f32),
    transpose everything for feature-major matmuls, cast matmul operands to
    bf16, and consolidate the small arrays."""
    bf16 = jnp.bfloat16
    up_w, up_b, enc_w, enc_b, dec_w, dec_b, head_w, head_b = params

    # Fusing `up` (no activation after it) into encoder layer 0 requires the
    # fused weight to have the same shape as the other encoder weights.
    assert IN_FEATURES == INNER_SIZE

    w0 = up_w @ enc_w[0]                       # (IN, INNER)   exact f32 fold
    b0 = up_b @ enc_w[0] + enc_b[0]            # (1, INNER)

    enc_w_t = jnp.stack(
        [w0.T] + [enc_w[i].T for i in range(1, N_INNER_LAYERS)]
    ).astype(bf16)                             # (L, INNER, INNER)
    enc_b_t = jnp.stack(
        [b0.T] + [enc_b[i].T for i in range(1, N_INNER_LAYERS)]
    )                                          # (L, INNER, 1)

    dec_w_t = jnp.swapaxes(dec_w, 1, 2).astype(bf16)   # (L, INNER, 2*INNER)
    dec_b_t = jnp.swapaxes(dec_b, 1, 2)                # (L, INNER, 1)

    b32 = jnp.concatenate([enc_b_t, dec_b_t], axis=0)  # (2L, INNER, 1) f32

    head_w_t = head_w.T.astype(bf16)                   # (OUT, INNER)
    head_b_t = head_b.reshape(OUT_FEATURES, 1)         # (OUT, 1) f32
    return (enc_w_t, dec_w_t, b32, head_w_t, head_b_t)


@functools.partial(jax.jit, static_argnames=("tb",))
def mlskipper_forward(x, prep, tb=2048):
    n, f = x.shape
    assert f == IN_FEATURES
    enc_w, dec_w, b32, head_w, head_b = prep

    tb_eff = _pick_batch_tile(n, tb)
    grid = (pl.cdiv(n, tb_eff),)   # no padding: Pallas masks the tail block

    def full_spec(a):
        nd = a.ndim
        return pl.BlockSpec(a.shape, lambda i, _n=nd: (0,) * _n)

    return pl.pallas_call(
        mlskipper_kernel,
        out_shape=jax.ShapeDtypeStruct((n, OUT_FEATURES), x.dtype),
        grid_spec=pltpu.PrefetchScalarGridSpec(
            num_scalar_prefetch=0,
            grid=grid,
            in_specs=[
                pl.BlockSpec((tb_eff, IN_FEATURES), lambda i: (i, 0)),
                full_spec(enc_w), full_spec(dec_w), full_spec(b32),
                full_spec(head_w), full_spec(head_b),
            ],
            out_specs=pl.BlockSpec((tb_eff, OUT_FEATURES), lambda i: (i, 0)),
        ),
        compiler_params=pltpu.CompilerParams(
            dimension_semantics=("parallel",),
        ),
    )(x, enc_w, dec_w, b32, head_w, head_b)


def init_params(key):
    """Deterministic init mimicking PyTorch's default U(-1/sqrt(fan_in), ...)."""
    ks = jax.random.split(key, 4)

    def lin(k, fan_in, fan_out):
        kw, kb = jax.random.split(k)
        bound = 1.0 / np.sqrt(fan_in)
        w = jax.random.uniform(kw, (fan_in, fan_out), jnp.float32, -bound, bound)
        b = jax.random.uniform(kb, (1, fan_out), jnp.float32, -bound, bound)
        return w, b

    up_w, up_b = lin(ks[0], IN_FEATURES, INNER_SIZE)

    enc = [lin(k, INNER_SIZE, INNER_SIZE)
           for k in jax.random.split(ks[1], N_INNER_LAYERS)]
    enc_w = jnp.stack([w for w, _ in enc])             # (L, INNER, INNER)
    enc_b = jnp.stack([b for _, b in enc])             # (L, 1, INNER)

    dec = [lin(k, 2 * INNER_SIZE, INNER_SIZE)
           for k in jax.random.split(ks[2], N_INNER_LAYERS)]
    dec_w = jnp.stack([w for w, _ in dec])             # (L, 2*INNER, INNER)
    dec_b = jnp.stack([b for _, b in dec])             # (L, 1, INNER)

    head_w, head_b = lin(ks[3], INNER_SIZE, OUT_FEATURES)

    return (up_w, up_b, enc_w, enc_b, dec_w, dec_b, head_w, head_b)


def reference_forward(x, params):
    """Pure-JAX f32 reference replicating the PyTorch forward."""
    up_w, up_b, enc_w, enc_b, dec_w, dec_b, head_w, head_b = params
    h = x @ up_w + up_b
    skips = []
    for i in range(N_INNER_LAYERS):
        h = _leaky_relu(h @ enc_w[i] + enc_b[i])
        skips.append(h)
    for i in range(N_INNER_LAYERS):
        cat = jnp.concatenate([h, skips[-(i + 1)]], axis=1)
        h = _leaky_relu(cat @ dec_w[i] + dec_b[i])
    return h @ head_w + head_b


if __name__ == "__main__":
    key = jax.random.PRNGKey(0)
    k_x, k_p = jax.random.split(key)
    params = init_params(k_p)
    prep = jax.tree_util.tree_map(jax.block_until_ready, prepare_params(params))

    # bf16 matmul operands (f32 accumulate) -> relaxed tolerance vs f32 reference
    def check(x, **kw):
        out = jax.block_until_ready(mlskipper_forward(x, prep, **kw))
        ref = reference_forward(x, params)
        np.testing.assert_allclose(np.asarray(out), np.asarray(ref),
                                   rtol=2e-2, atol=5e-2)

    # small batch: single, partially-filled block (Pallas masks the tail)
    check(jax.random.normal(k_x, (16, IN_FEATURES), jnp.float32))

    # medium batch with the default (large) tile
    check(jax.random.normal(jax.random.fold_in(k_x, 1), (384, IN_FEATURES),
                            jnp.float32))

    # same batch forced onto a multi-step grid (exercises grid > 1)
    check(jax.random.normal(jax.random.fold_in(k_x, 2), (384, IN_FEATURES),
                            jnp.float32), tb=128)

    print("KERNEL_OK")
</pallas_src>

<mosaic_0001>
module attributes {stable_mosaic.version = 11 : i64} {
  func.func @mlskipper_kernel(%arg0: i32, %arg1: memref<128x32xf32, #tpu.memory_space<vmem>>, %arg2: memref<2x32x32xbf16, #tpu.memory_space<vmem>>, %arg3: memref<2x32x64xbf16, #tpu.memory_space<vmem>>, %arg4: memref<4x32x1xf32, #tpu.memory_space<vmem>>, %arg5: memref<16x32xbf16, #tpu.memory_space<vmem>>, %arg6: memref<16x1xf32, #tpu.memory_space<vmem>>, %arg7: memref<128x16xf32, #tpu.memory_space<vmem>>) attributes {dimension_semantics = [#tpu.dimension_semantics<parallel>], iteration_bounds = array<i64: 1>, scalar_prefetch = 0 : i64, scratch_operands = 0 : i64, tpu.core_type = #tpu.core_type<tc>, window_params = [{transform_indices = @transform_0, window_bounds = array<i64: 128, 32>}, {pipeline_mode = #tpu.pipeline_mode<synchronous>, transform_indices = @transform_1, window_bounds = array<i64: 2, 32, 32>}, {pipeline_mode = #tpu.pipeline_mode<synchronous>, transform_indices = @transform_2, window_bounds = array<i64: 2, 32, 64>}, {pipeline_mode = #tpu.pipeline_mode<synchronous>, transform_indices = @transform_3, window_bounds = array<i64: 4, 32, 1>}, {pipeline_mode = #tpu.pipeline_mode<synchronous>, transform_indices = @transform_4, window_bounds = array<i64: 16, 32>}, {pipeline_mode = #tpu.pipeline_mode<synchronous>, transform_indices = @transform_5, window_bounds = array<i64: 16, 1>}, {transform_indices = @transform_6, window_bounds = array<i64: 128, 16>}]} {
    %c0 = arith.constant 0 : index
    %c0_0 = arith.constant 0 : index
    %0 = vector.load %arg1[%c0, %c0_0] : memref<128x32xf32, #tpu.memory_space<vmem>>, vector<128x32xf32>
    %1 = tpu.transpose %0, [1, 0] : vector<128x32xf32> -> vector<32x128xf32>
    %2 = arith.truncf %1 : vector<32x128xf32> to vector<32x128xbf16>
    %c0_1 = arith.constant 0 : index
    %c0_2 = arith.constant 0 : index
    %c0_3 = arith.constant 0 : index
    %3 = vector.load %arg2[%c0_1, %c0_2, %c0_3] : memref<2x32x32xbf16, #tpu.memory_space<vmem>>, vector<1x32x32xbf16>
    %4 = vector.shape_cast %3 : vector<1x32x32xbf16> to vector<32x32xbf16>
    %cst = arith.constant dense<0.000000e+00> : vector<32x128xf32>
    %5 = tpu.matmul %4, %2, %cst {dimension_numbers = #tpu.dot_dimension_numbers<[1], [0], [0], [1], [0, 0, 1, 1], [], []>} : vector<32x32xbf16>, vector<32x128xbf16>, vector<32x128xf32> -> vector<32x128xf32>
    %c0_4 = arith.constant 0 : index
    %c0_5 = arith.constant 0 : index
    %c0_6 = arith.constant 0 : index
    %6 = vector.load %arg4[%c0_4, %c0_5, %c0_6] : memref<4x32x1xf32, #tpu.memory_space<vmem>>, vector<1x32x1xf32>
    %7 = vector.shape_cast %6 : vector<1x32x1xf32> to vector<32x1xf32>
    %8 = vector.broadcast %7 : vector<32x1xf32> to vector<32x128xf32>
    %9 = arith.addf %5, %8 : vector<32x128xf32>
    %cst_7 = arith.constant 0.00999999977 : f32
    %10 = vector.broadcast %cst_7 : f32 to vector<32x128xf32>
    %11 = arith.mulf %10, %9 : vector<32x128xf32>
    %12 = arith.maximumf %9, %11 : vector<32x128xf32>
    %13 = arith.truncf %12 : vector<32x128xf32> to vector<32x128xbf16>
    %c1 = arith.constant 1 : index
    %c0_8 = arith.constant 0 : index
    %c0_9 = arith.constant 0 : index
    %14 = vector.load %arg2[%c1, %c0_8, %c0_9] : memref<2x32x32xbf16, #tpu.memory_space<vmem>>, vector<1x32x32xbf16>
    %15 = vector.shape_cast %14 : vector<1x32x32xbf16> to vector<32x32xbf16>
    %16 = arith.truncf %12 : vector<32x128xf32> to vector<32x128xbf16>
    %cst_10 = arith.constant dense<0.000000e+00> : vector<32x128xf32>
    %17 = tpu.matmul %15, %16, %cst_10 {dimension_numbers = #tpu.dot_dimension_numbers<[1], [0], [0], [1], [0, 0, 1, 1], [], []>} : vector<32x32xbf16>, vector<32x128xbf16>, vector<32x128xf32> -> vector<32x128xf32>
    %c1_11 = arith.constant 1 : index
    %c0_12 = arith.constant 0 : index
    %c0_13 = arith.constant 0 : index
    %18 = vector.load %arg4[%c1_11, %c0_12, %c0_13] : memref<4x32x1xf32, #tpu.memory_space<vmem>>, vector<1x32x1xf32>
    %19 = vector.shape_cast %18 : vector<1x32x1xf32> to vector<32x1xf32>
    %20 = vector.broadcast %19 : vector<32x1xf32> to vector<32x128xf32>
    %21 = arith.addf %17, %20 : vector<32x128xf32>
    %cst_14 = arith.constant 0.00999999977 : f32
    %22 = vector.broadcast %cst_14 : f32 to vector<32x128xf32>
    %23 = arith.mulf %22, %21 : vector<32x128xf32>
    %24 = arith.maximumf %21, %23 : vector<32x128xf32>
    %25 = arith.truncf %24 : vector<32x128xf32> to vector<32x128xbf16>
    %26 = arith.truncf %24 : vector<32x128xf32> to vector<32x128xbf16>
    %27 = tpu.concatenate %26, %25 in 0 : vector<32x128xbf16>, vector<32x128xbf16> -> vector<64x128xbf16>
    %c0_15 = arith.constant 0 : index
    %c0_16 = arith.constant 0 : index
    %c0_17 = arith.constant 0 : index
    %28 = vector.load %arg3[%c0_15, %c0_16, %c0_17] : memref<2x32x64xbf16, #tpu.memory_space<vmem>>, vector<1x32x64xbf16>
    %29 = vector.shape_cast %28 : vector<1x32x64xbf16> to vector<32x64xbf16>
    %cst_18 = arith.constant dense<0.000000e+00> : vector<32x128xf32>
    %30 = tpu.matmul %29, %27, %cst_18 {dimension_numbers = #tpu.dot_dimension_numbers<[1], [0], [0], [1], [0, 0, 1, 1], [], []>} : vector<32x64xbf16>, vector<64x128xbf16>, vector<32x128xf32> -> vector<32x128xf32>
    %c2 = arith.constant 2 : index
    %c0_19 = arith.constant 0 : index
    %c0_20 = arith.constant 0 : index
    %31 = vector.load %arg4[%c2, %c0_19, %c0_20] : memref<4x32x1xf32, #tpu.memory_space<vmem>>, vector<1x32x1xf32>
    %32 = vector.shape_cast %31 : vector<1x32x1xf32> to vector<32x1xf32>
    %33 = vector.broadcast %32 : vector<32x1xf32> to vector<32x128xf32>
    %34 = arith.addf %30, %33 : vector<32x128xf32>
    %cst_21 = arith.constant 0.00999999977 : f32
    %35 = vector.broadcast %cst_21 : f32 to vector<32x128xf32>
    %36 = arith.mulf %35, %34 : vector<32x128xf32>
    %37 = arith.maximumf %34, %36 : vector<32x128xf32>
    %38 = arith.truncf %37 : vector<32x128xf32> to vector<32x128xbf16>
    %39 = tpu.concatenate %38, %13 in 0 : vector<32x128xbf16>, vector<32x128xbf16> -> vector<64x128xbf16>
    %c1_22 = arith.constant 1 : index
    %c0_23 = arith.constant 0 : index
    %c0_24 = arith.constant 0 : index
    %40 = vector.load %arg3[%c1_22, %c0_23, %c0_24] : memref<2x32x64xbf16, #tpu.memory_space<vmem>>, vector<1x32x64xbf16>
    %41 = vector.shape_cast %40 : vector<1x32x64xbf16> to vector<32x64xbf16>
    %cst_25 = arith.constant dense<0.000000e+00> : vector<32x128xf32>
    %42 = tpu.matmul %41, %39, %cst_25 {dimension_numbers = #tpu.dot_dimension_numbers<[1], [0], [0], [1], [0, 0, 1, 1], [], []>} : vector<32x64xbf16>, vector<64x128xbf16>, vector<32x128xf32> -> vector<32x128xf32>
    %c3 = arith.constant 3 : index
    %c0_26 = arith.constant 0 : index
    %c0_27 = arith.constant 0 : index
    %43 = vector.load %arg4[%c3, %c0_26, %c0_27] : memref<4x32x1xf32, #tpu.memory_space<vmem>>, vector<1x32x1xf32>
    %44 = vector.shape_cast %43 : vector<1x32x1xf32> to vector<32x1xf32>
    %45 = vector.broadcast %44 : vector<32x1xf32> to vector<32x128xf32>
    %46 = arith.addf %42, %45 : vector<32x128xf32>
    %cst_28 = arith.constant 0.00999999977 : f32
    %47 = vector.broadcast %cst_28 : f32 to vector<32x128xf32>
    %48 = arith.mulf %47, %46 : vector<32x128xf32>
    %49 = arith.maximumf %46, %48 : vector<32x128xf32>
    %c0_29 = arith.constant 0 : index
    %c0_30 = arith.constant 0 : index
    %50 = vector.load %arg5[%c0_29, %c0_30] : memref<16x32xbf16, #tpu.memory_space<vmem>>, vector<16x32xbf16>
    %51 = arith.truncf %49 : vector<32x128xf32> to vector<32x128xbf16>
    %cst_31 = arith.constant dense<0.000000e+00> : vector<16x128xf32>
    %52 = tpu.matmul %50, %51, %cst_31 {dimension_numbers = #tpu.dot_dimension_numbers<[1], [0], [0], [1], [0, 0, 1, 1], [], []>} : vector<16x32xbf16>, vector<32x128xbf16>, vector<16x128xf32> -> vector<16x128xf32>
    %c0_32 = arith.constant 0 : index
    %c0_33 = arith.constant 0 : index
    %53 = vector.load %arg6[%c0_32, %c0_33] : memref<16x1xf32, #tpu.memory_space<vmem>>, vector<16x1xf32>
    %54 = vector.broadcast %53 : vector<16x1xf32> to vector<16x128xf32>
    %55 = arith.addf %52, %54 : vector<16x128xf32>
    %56 = tpu.transpose %55, [1, 0] : vector<16x128xf32> -> vector<128x16xf32>
    %c0_34 = arith.constant 0 : index
    %c0_35 = arith.constant 0 : index
    %57 = vector.load %arg7[%c0_34, %c0_35] : memref<128x16xf32, #tpu.memory_space<vmem>>, vector<128x16xf32>
    tpu.vector_store %arg7[%c0_34, %c0_35], %56 {strides = array<i32>} : memref<128x16xf32, #tpu.memory_space<vmem>>, vector<128x16xf32>,
    return
  }
  func.func @transform_0(%arg0: i32) -> (i32, i32) {
    %c0_i32 = arith.constant 0 : i32
    %c0_i32_0 = arith.constant 0 : i32
    return %arg0, %c0_i32 : i32, i32
  }
  func.func @transform_1(%arg0: i32) -> (i32, i32, i32) {
    %c0_i32 = arith.constant 0 : i32
    %c0_i32_0 = arith.constant 0 : i32
    %c0_i32_1 = arith.constant 0 : i32
    %c0_i32_2 = arith.constant 0 : i32
    return %c0_i32, %c0_i32_0, %c0_i32_1 : i32, i32, i32
  }
  func.func @transform_2(%arg0: i32) -> (i32, i32, i32) {
    %c0_i32 = arith.constant 0 : i32
    %c0_i32_0 = arith.constant 0 : i32
    %c0_i32_1 = arith.constant 0 : i32
    %c0_i32_2 = arith.constant 0 : i32
    return %c0_i32, %c0_i32_0, %c0_i32_1 : i32, i32, i32
  }
  func.func @transform_3(%arg0: i32) -> (i32, i32, i32) {
    %c0_i32 = arith.constant 0 : i32
    %c0_i32_0 = arith.constant 0 : i32
    %c0_i32_1 = arith.constant 0 : i32
    %c0_i32_2 = arith.constant 0 : i32
    return %c0_i32, %c0_i32_0, %c0_i32_1 : i32, i32, i32
  }
  func.func @transform_4(%arg0: i32) -> (i32, i32) {
    %c0_i32 = arith.constant 0 : i32
    %c0_i32_0 = arith.constant 0 : i32
    %c0_i32_1 = arith.constant 0 : i32
    return %c0_i32, %c0_i32_0 : i32, i32
  }
  func.func @transform_5(%arg0: i32) -> (i32, i32) {
    %c0_i32 = arith.constant 0 : i32
    %c0_i32_0 = arith.constant 0 : i32
    %c0_i32_1 = arith.constant 0 : i32
    return %c0_i32, %c0_i32_0 : i32, i32
  }
  func.func @transform_6(%arg0: i32) -> (i32, i32) {
    %c0_i32 = arith.constant 0 : i32
    %c0_i32_0 = arith.constant 0 : i32
    return %arg0, %c0_i32 : i32, i32
  }
}

</mosaic_0001>

<bundles_post_ra>
// kernel: mlskipper_forward.1
= control target key start
LH: loop header
LB: loop body
LE: loop exit
PB: predicated region body
PF: predicated region fallthrough
CT: control target
= control target key end

     0   :  { %s991_s0 = inlined_call_operand.vmem [shape: f32[16,32], index: 0, kind: input, shape index: {}]   ;;  %s992_s1 = inlined_call_operand.vmem [shape: bf16[2,32,32], index: 1, kind: input, shape index: {}]   ;;  %s993_s2 = inlined_call_operand.vmem [shape: bf16[2,32,64], index: 2, kind: input, shape index: {}]   ;;  %s994_s3 = inlined_call_operand.vmem [shape: f32[4,32,1], index: 3, kind: input, shape index: {}]   ;;  %s995_s4 = inlined_call_operand.vmem [shape: bf16[16,32], index: 4, kind: input, shape index: {}]   ;;  %s996_s5 = inlined_call_operand.vmem [shape: f32[16,1], index: 5, kind: input, shape index: {}]   ;;  %s997_s6 = inlined_call_operand.hbm [shape: f32[16,16], index: 6, kind: output, shape index: {}]  }
   0x1   :  { %v25_v0 = vld [vmem:[%s991_s0] sm:$0xff]  ;;  %v26_v1 = vld [vmem:[%s991_s0 + $0x8] sm:$0xff]  ;;  %v27_v2 = vld [vmem:[%s991_s0 + $0x10] sm:$0xff] }
   0x2   :  { %41 = vxpose.xlu0.b32.start [1/16] (narrow) %v25_v0, 32 }
   0x6   :  { %42 = vxpose.xlu0.b32.cont [2/16] (narrow) %v26_v1, 32 }
   0x7   :  { %11 = vsyncpa [#allocation3], 0  ;;  %v28_v3 = vld [vmem:[%s991_s0 + $0x18] sm:$0xff]  ;;  %v29_v4 = vld [vmem:[%s991_s0 + $0x20] sm:$0xff]  ;;  %vm113_vm0 = vcmask 261120   ;;  %v772_v8 = vmov 0  }
   0x8   :  { %v739_v5 = vld [vmem:[%s992_s1] sm:$0xff]   ;;  %v30_v6 = vld [vmem:[%s991_s0 + $0x28] sm:$0xff]  ;;  %737 = vset.pattern.permute.xlu1 %v772_v8  ;;  %v31_v9 = vld [vmem:[%s991_s0 + $0x30] sm:$0xff]  ;;  %vm323_vm1 = vcmask 523264   ;;  %vm774_vm2 = vmmov 0   ;;  %vm589_vm3 = vcmask 130048  }
   0x9   :  { %687 = vmatprep.mubr.msk.bf16.mxu0 %vm113_vm0, %v739_v5  ;;  %v79_v7 = vld [vmem:[%s994_s3] sm:$0xff]  ;;  %v80_v10 = vld [vmem:[%s994_s3 + $0x8] sm:$0xff]  ;;  %v32_v11 = vld [vmem:[%s991_s0 + $0x38] sm:$0xff] }
   0xa   :  { %43 = vxpose.xlu0.b32.cont [3/16] (narrow) %v27_v2, 32  ;;  %85 = vperm.xlu1 %737, %v79_v7   ;;  %v81_v12 = vld [vmem:[%s994_s3 + $0x10] sm:$0xff]  ;;  %v33_v13 = vld [vmem:[%s991_s0 + $0x40] sm:$0xff]  ;;  %v82_v14 = vld [vmem:[%s994_s3 + $0x18] sm:$0xff] }
   0xb   :  { %v34_v15 = vld [vmem:[%s991_s0 + $0x48] sm:$0xff]  ;;  %v630_v16 = vld [vmem:[%s994_s3 + $0x20] sm:$0xff]  ;;  %v35_v17 = vld [vmem:[%s991_s0 + $0x50] sm:$0xff] }
   0xc   :  { %v631_v18 = vld [vmem:[%s994_s3 + $0x28] sm:$0xff]  ;;  %v36_v19 = vld [vmem:[%s991_s0 + $0x58] sm:$0xff]  ;;  %v632_v20 = vld [vmem:[%s994_s3 + $0x30] sm:$0xff] }
   0xd   :  { %v37_v21 = vld [vmem:[%s991_s0 + $0x60] sm:$0xff]  ;;  %v633_v22 = vld [vmem:[%s994_s3 + $0x38] sm:$0xff]  ;;  %v38_v23 = vld [vmem:[%s991_s0 + $0x68] sm:$0xff] }
   0xe   :  { %44 = vxpose.xlu0.b32.cont [4/16] (narrow) %v28_v3, 32  ;;  %90 = vperm.xlu1 %737, %v80_v10   ;;  %v638_v24 = vld [vmem:[%s994_s3 + $0x40] sm:$0xff]  ;;  %v39_v25 = vld [vmem:[%s991_s0 + $0x70] sm:$0xff]  ;;  %v639_v26 = vld [vmem:[%s994_s3 + $0x48] sm:$0xff] }
   0xf   :  { %v40_v27 = vld [vmem:[%s991_s0 + $0x78] sm:$0xff]  ;;  %v640_v28 = vld [vmem:[%s994_s3 + $0x50] sm:$0xff]  ;;  %v650_v30 = vld [vmem:[%s994_s3 + $0x60] sm:$0xff] }
  0x10   :  { %v641_v29 = vld [vmem:[%s994_s3 + $0x58] sm:$0xff]  ;;  %v651_v31 = vld [vmem:[%s994_s3 + $0x68] sm:$0xff]  ;;  %v652_v32 = vld [vmem:[%s994_s3 + $0x70] sm:$0xff] }
  0x11   :  { %v653_v33 = vld [vmem:[%s994_s3 + $0x78] sm:$0xff]  ;;  %v497_v34 = vld [vmem:[%s996_s5 + $0x8] sm:$0xff]  ;;  %v741_v42 = vld [vmem:[%s992_s1 + $0x10] sm:$0xff]  }
  0x12   :  { %45 = vxpose.xlu0.b32.cont [5/16] (narrow) %v29_v4, 32  ;;  %95 = vperm.xlu1 %737, %v81_v12   ;;  %v740_v41 = vld [vmem:[%s992_s1 + $0x8] sm:$0xff]   ;;  %v742_v1 = vld [vmem:[%s992_s1 + $0x18] sm:$0xff]   ;;  %v743_v2 = vld [vmem:[%s993_s2] sm:$0xff]  }
  0x13   :  { %695 = vmatprep.mubr.msk.bf16.mxu1 %vm113_vm0, %v741_v42 }
  0x16   :  { %46 = vxpose.xlu0.b32.cont [6/16] (narrow) %v30_v6, 32  ;;  %100 = vperm.xlu1 %737, %v82_v14  }
  0x1a   :  { %47 = vxpose.xlu0.b32.cont [7/16] (narrow) %v31_v9, 32  ;;  %191 = vperm.xlu1 %737, %v630_v16  }
  0x1e   :  { %48 = vxpose.xlu0.b32.cont [8/16] (narrow) %v32_v11, 32  ;;  %196 = vperm.xlu1 %737, %v631_v18  }
  0x22   :  { %49 = vxpose.xlu0.b32.cont [9/16] (narrow) %v33_v13, 32  ;;  %201 = vperm.xlu1 %737, %v632_v20  }
  0x26   :  { %50 = vxpose.xlu0.b32.cont [10/16] (narrow) %v34_v15, 32  ;;  %206 = vperm.xlu1 %737, %v633_v22  }
  0x2a   :  { %51 = vxpose.xlu0.b32.cont [11/16] (narrow) %v35_v17, 32  ;;  %295 = vperm.xlu1 %737, %v638_v24  }
  0x2e   :  { %52 = vxpose.xlu0.b32.cont [12/16] (narrow) %v36_v19, 32  ;;  %300 = vperm.xlu1 %737, %v639_v26   ;;  %v745_v26 = vld [vmem:[%s993_s2 + $0x10] sm:$0xff]  }
  0x32   :  { %53 = vxpose.xlu0.b32.cont [13/16] (narrow) %v37_v21, 32  ;;  %305 = vperm.xlu1 %737, %v640_v28  }
  0x36   :  { %54 = vxpose.xlu0.b32.cont [14/16] (narrow) %v38_v23, 32  ;;  %310 = vperm.xlu1 %737, %v641_v29  }
  0x3a   :  { %55 = vxpose.xlu0.b32.cont [15/16] (narrow) %v39_v25, 32  ;;  %401 = vperm.xlu1 %737, %v650_v30   ;;  %v744_v25 = vld [vmem:[%s993_s2 + $0x8] sm:$0xff]  }
  0x3e   :  { %56 = vxpose.xlu0.b32.end [16/16] (narrow) %v40_v27, 32  ;;  %406 = vperm.xlu1 %737, %v651_v31  }
  0x42   :  { %411 = vperm.xlu1 %737, %v652_v32  }
  0x46   :  { %416 = vperm.xlu1 %737, %v653_v33  }
  0x4a   :  { %505 = vperm.xlu1 %737, %v497_v34  }
  0x67   :  { %738 = vset.pattern.permute.xlu0 %v772_v8 }
  0x82   :  { %v57_v35 = vpop.trf.xlu0 }
  0x86   :  { %v58_v36 = vpop.trf.xlu0 }
  0x87   :  { %v73_v37 = vpack.c.bf16 %v58_v36, %v57_v35 }
  0x89   :  { %683 = vmatprep.subr.bf16.mxu0 %v73_v37  ;;  %v86_v43 = vpop.permute.xlu1 %85 }
  0x8a   :  { %684 = vmatpush3.bf16.msra.mxu0 %v73_v37  ;;  %v59_v38 = vpop.trf.xlu0 }
  0x8d   :  { %v91_v44 = vpop.permute.xlu1 %90 }
  0x8e   :  { %v60_v39 = vpop.trf.xlu0 }
  0x8f   :  { %v74_v40 = vpack.c.bf16 %v60_v39, %v59_v38 }
  0x91   :  { %685 = vmatprep.subr.bf16.mxu0 %v74_v40  ;;  %v96_v45 = vpop.permute.xlu1 %95 }
  0x92   :  { %686 = vmatpush3.bf16.msra.mxu0 %v74_v40 }
  0x95   :  { %688 = vmatmul.mubr.msk.bf16.vlgmr.msra.gmra.mrb[0].mxu0 %vm113_vm0, %v740_v41  ;;  %v101_v49 = vpop.permute.xlu1 %100 }
  0x96   :  { %707 = vmatprep.mubr.msk.bf16.mxu0 %vm323_vm1, %v743_v2 }
  0x99   :  { %v192_v3 = vpop.permute.xlu1 %191 }
  0x9d   :  { %v197_v4 = vpop.permute.xlu1 %196 }
  0xa1   :  { %v202_v5 = vpop.permute.xlu1 %201 }
  0xa5   :  { %v207_v9 = vpop.permute.xlu1 %206 }
  0xa9   :  { %v296_v27 = vpop.permute.xlu1 %295 }
  0xad   :  { %v301_v28 = vpop.permute.xlu1 %300 }
  0xb1   :  { %v306_v29 = vpop.permute.xlu1 %305 }
  0xb5   :  { %v311_v33 = vpop.permute.xlu1 %310 }
 0x168   :  { %v689_v46 = vpop.f32.mrb[0].mxu0 }
 0x169   :  { %v163_v47 = vadd.f32 %v689_v46, %v96_v45  ;;  %v154_v48 = vpop.f32.mrb[1].mxu0 }
 0x16a   :  { %v155_v50 = vadd.f32 %v154_v48, %v86_v43  ;;  %v690_v51 = vpop.f32.mrb[2].mxu0 }
 0x16b   :  { %v171_v52 = vmul.f32 0.01, %v163_v47  ;;  %v166_v53 = vadd.f32 %v690_v51, %v101_v49  ;;  %v157_v54 = vpop.f32.mrb[3].mxu0  ;;  %v746_v49 = vld [vmem:[%s993_s2 + $0x18] sm:$0xff]   ;;  %v496_v51 = vld [vmem:[%s996_s5] sm:$0xff] }
 0x16c   :  { %v169_v55 = vmul.f32 0.01, %v155_v50  ;;  %v158_v56 = vadd.f32 %v157_v54, %v91_v44  ;;  %500 = vperm.xlu0 %738, %v496_v51  }
 0x16d   :  { %v172_v57 = vmul.f32 0.01, %v166_v53  ;;  %v175_v59 = vmax.f32 %v163_v47, %v171_v52  ;;  %v402_v52 = vpop.permute.xlu1 %401 }
 0x16e   :  { %v170_v58 = vmul.f32 0.01, %v158_v56  ;;  %v173_v61 = vmax.f32 %v155_v50, %v169_v55  ;;  %v773_v50 = vmov 0.0  }
 0x16f   :  { %v176_v60 = vmax.f32 %v166_v53, %v172_v57 }
 0x170   :  { %v174_v62 = vmax.f32 %v158_v56, %v170_v58 }
 0x171   :  { %v924_v63 = vpack.c.bf16 %v176_v60, %v175_v59  ;;  %v407_v53 = vpop.permute.xlu1 %406 }
 0x172   :  { %v926_v0 = vpack.c.bf16 %v174_v62, %v173_v61 }
 0x174   :  { %691 = vmatprep.subr.bf16.mxu1 %v926_v0 }
 0x175   :  { %692 = vmatpush3.bf16.msra.mxu1 %v926_v0  ;;  %v412_v54 = vpop.permute.xlu1 %411 }
 0x176   :  { %693 = vmatprep.subr.bf16.mxu1 %v924_v63 }
 0x179   :  { %694 = vmatpush3.bf16.msra.mxu1 %v924_v63  ;;  %v417_v58 = vpop.permute.xlu1 %416 }
 0x17c   :  { %696 = vmatmul.mubr.msk.bf16.vlgmr.msra.gmra.mrb[0].mxu1 %vm113_vm0, %v742_v1 }
 0x17d   :  { %719 = vmatprep.mubr.msk.bf16.mxu1 %vm323_vm1, %v745_v26 }
 0x24f   :  { %v697_v6 = vpop.f32.mrb[0].mxu1 }
 0x250   :  { %v268_v7 = vadd.f32 %v697_v6, %v202_v5  ;;  %v259_v8 = vpop.f32.mrb[1].mxu1 }
 0x251   :  { %v260_v10 = vadd.f32 %v259_v8, %v192_v3  ;;  %v698_v11 = vpop.f32.mrb[2].mxu1 }
 0x252   :  { %v276_v12 = vmul.f32 0.01, %v268_v7  ;;  %v271_v13 = vadd.f32 %v698_v11, %v207_v9  ;;  %v262_v14 = vpop.f32.mrb[3].mxu1  ;;  %v501_v11 = vpop.permute.xlu0 %500 }
 0x253   :  { %v274_v15 = vmul.f32 0.01, %v260_v10  ;;  %v263_v16 = vadd.f32 %v262_v14, %v197_v4 }
 0x254   :  { %v277_v17 = vmul.f32 0.01, %v271_v13  ;;  %v280_v19 = vmax.f32 %v268_v7, %v276_v12 }
 0x255   :  { %v275_v18 = vmul.f32 0.01, %v263_v16  ;;  %v278_v21 = vmax.f32 %v260_v10, %v274_v15  ;;  %v747_v10 = vld [vmem:[%s995_s4] sm:$0xff]  }
 0x256   :  { %v281_v20 = vmax.f32 %v271_v13, %v277_v17  ;;  %v506_v17 = vpop.permute.xlu1 %505 }
 0x257   :  { %v279_v22 = vmax.f32 %v263_v16, %v275_v18 }
 0x258   :  { %v283_v23 = vpack.c.bf16 %v281_v20, %v280_v19 }
 0x259   :  { %v282_v24 = vpack.c.bf16 %v279_v22, %v278_v21 }
 0x25b   :  { %699 = vmatprep.subr.bf16.mxu0 %v282_v24 }
 0x25c   :  { %700 = vmatpush3.bf16.msra.mxu0 %v282_v24 }
 0x25d   :  { %701 = vmatprep.subr.bf16.mxu0 %v283_v23 }
 0x260   :  { %702 = vmatpush3.bf16.msra.mxu0 %v283_v23 }
 0x261   :  { %703 = vmatprep.subr.bf16.mxu0 %v282_v24 }
 0x264   :  { %704 = vmatpush3.bf16.msra.mxu0 %v282_v24 }
 0x265   :  { %705 = vmatprep.subr.bf16.mxu0 %v283_v23 }
 0x268   :  { %706 = vmatpush3.bf16.msra.mxu0 %v283_v23 }
 0x269   :  { %723 = vmatprep.subr.bf16.mxu0 %v773_v50 }
 0x26b   :  { %708 = vmatmul.mubr.msk.bf16.vlgmr.msra.gmra.mrb[4].mxu0 %vm323_vm1, %v744_v25 }
 0x26c   :  { %727 = vmatprep.mubr.msk.bf16.mxu0 %vm774_vm2, %v773_v50 }
 0x33e   :  { %v709_v30 = vpop.f32.mrb[4].mxu0 }
 0x33f   :  { %v373_v31 = vadd.f32 %v709_v30, %v306_v29  ;;  %v364_v32 = vpop.f32.mrb[5].mxu0 }
 0x340   :  { %v365_v34 = vadd.f32 %v364_v32, %v296_v27  ;;  %v710_v35 = vpop.f32.mrb[6].mxu0 }
 0x341   :  { %v381_v36 = vmul.f32 0.01, %v373_v31  ;;  %v376_v37 = vadd.f32 %v710_v35, %v311_v33  ;;  %v367_v38 = vpop.f32.mrb[7].mxu0 }
 0x342   :  { %v379_v39 = vmul.f32 0.01, %v365_v34  ;;  %v368_v40 = vadd.f32 %v367_v38, %v301_v28 }
 0x343   :  { %v382_v41 = vmul.f32 0.01, %v376_v37  ;;  %v385_v43 = vmax.f32 %v373_v31, %v381_v36 }
 0x344   :  { %v380_v42 = vmul.f32 0.01, %v368_v40  ;;  %v383_v45 = vmax.f32 %v365_v34, %v379_v39 }
 0x345   :  { %v386_v44 = vmax.f32 %v376_v37, %v382_v41 }
 0x346   :  { %v384_v46 = vmax.f32 %v368_v40, %v380_v42 }
 0x347   :  { %v388_v47 = vpack.c.bf16 %v386_v44, %v385_v43 }
 0x348   :  { %v387_v48 = vpack.c.bf16 %v384_v46, %v383_v45 }
 0x34a   :  { %711 = vmatprep.subr.bf16.mxu1 %v387_v48 }
 0x34b   :  { %712 = vmatpush3.bf16.msra.mxu1 %v387_v48 }
 0x34c   :  { %713 = vmatprep.subr.bf16.mxu1 %v388_v47 }
 0x34f   :  { %714 = vmatpush3.bf16.msra.mxu1 %v388_v47 }
 0x350   :  { %715 = vmatprep.subr.bf16.mxu1 %v926_v0 }
 0x353   :  { %716 = vmatpush3.bf16.msra.mxu1 %v926_v0 }
 0x354   :  { %717 = vmatprep.subr.bf16.mxu1 %v924_v63 }
 0x357   :  { %718 = vmatpush3.bf16.msra.mxu1 %v924_v63 }
 0x35a   :  { %720 = vmatmul.mubr.msk.bf16.vlgmr.msra.gmra.mrb[4].mxu1 %vm323_vm1, %v746_v49 }
 0x42d   :  { %v721_v55 = vpop.f32.mrb[4].mxu1 }
 0x42e   :  { %v478_v56 = vadd.f32 %v721_v55, %v412_v54  ;;  %v469_v57 = vpop.f32.mrb[5].mxu1 }
 0x42f   :  { %v470_v59 = vadd.f32 %v469_v57, %v402_v52  ;;  %v722_v60 = vpop.f32.mrb[6].mxu1 }
 0x430   :  { %v486_v61 = vmul.f32 0.01, %v478_v56  ;;  %v481_v62 = vadd.f32 %v722_v60, %v417_v58  ;;  %v472_v63 = vpop.f32.mrb[7].mxu1 }
 0x431   :  { %v484_v0 = vmul.f32 0.01, %v470_v59  ;;  %v473_v1 = vadd.f32 %v472_v63, %v407_v53 }
 0x432   :  { %v487_v2 = vmul.f32 0.01, %v481_v62  ;;  %v490_v4 = vmax.f32 %v478_v56, %v486_v61 }
 0x433   :  { %v485_v3 = vmul.f32 0.01, %v473_v1  ;;  %v488_v6 = vmax.f32 %v470_v59, %v484_v0 }
 0x434   :  { %v491_v5 = vmax.f32 %v481_v62, %v487_v2 }
 0x435   :  { %v489_v7 = vmax.f32 %v473_v1, %v485_v3 }
 0x436   :  { %v495_v8 = vpack.c.bf16 %v491_v5, %v490_v4 }
 0x437   :  { %v494_v9 = vpack.c.bf16 %v489_v7, %v488_v6 }
 0x439   :  { %724 = vmatpush3.bf16.msra.mxu0 %v494_v9 }
 0x43a   :  { %725 = vmatprep.subr.bf16.mxu0 %v773_v50 }
 0x43d   :  { %726 = vmatpush3.bf16.msra.mxu0 %v495_v8 }
 0x440   :  { %728 = vmatmul.mubr.msk.bf16.vlgmr.msra.gmra.mrb[8].mxu0 %vm113_vm0, %v747_v10 }
 0x513   :  { %v550_v12 = vpop.f32.mrb[8].mxu0 }
 0x514   :  { %v551_v13 = vadd.f32 %v550_v12, %v501_v11  ;;  %v729_v14 = vpop.f32.mrb[9].mxu0 }
 0x515   :  { %v553_v15 = vpop.f32.mrb[10].mxu0 }
 0x516   :  { %v730_v16 = vpop.f32.mrb[11].mxu0  ;;  %557 = vxpose.xlu1.b32.start [1/2] (short) %v551_v13, 128  ;;  %v554_v18 = vadd.f32 %v553_v15, %v506_v17 }
 0x51a   :  { %558 = vxpose.xlu1.b32.end [2/2] (short) %v554_v18, 128 }
 0x596   :  { %v573_v19 = vpop.trf.xlu1 }
 0x597   :  { %590 = vst.msk [vmem:[#allocation2] sm:$0xff] %vm589_vm3, %v573_v19 }
 0x59a   :  { %v574_v20 = vpop.trf.xlu1 }
 0x59b   :  { %591 = vst.msk [vmem:[#allocation2 + $0x8] sm:$0xff] %vm589_vm3, %v574_v20 }
 0x59e   :  { %v575_v21 = vpop.trf.xlu1 }
 0x59f   :  { %592 = vst.msk [vmem:[#allocation2 + $0x10] sm:$0xff] %vm589_vm3, %v575_v21 }
 0x5a2   :  { %v576_v22 = vpop.trf.xlu1 }
 0x5a3   :  { %593 = vst.msk [vmem:[#allocation2 + $0x18] sm:$0xff] %vm589_vm3, %v576_v22 }
 0x5a6   :  { %v577_v23 = vpop.trf.xlu1 }
 0x5a7   :  { %594 = vst.msk [vmem:[#allocation2 + $0x20] sm:$0xff] %vm589_vm3, %v577_v23 }
 0x5aa   :  { %v578_v24 = vpop.trf.xlu1 }
 0x5ab   :  { %595 = vst.msk [vmem:[#allocation2 + $0x28] sm:$0xff] %vm589_vm3, %v578_v24 }
 0x5ae   :  { %v579_v25 = vpop.trf.xlu1 }
 0x5af   :  { %596 = vst.msk [vmem:[#allocation2 + $0x30] sm:$0xff] %vm589_vm3, %v579_v25 }
 0x5b2   :  { %v580_v26 = vpop.trf.xlu1 }
 0x5b3   :  { %597 = vst.msk [vmem:[#allocation2 + $0x38] sm:$0xff] %vm589_vm3, %v580_v26 }
 0x5b6   :  { %v581_v27 = vpop.trf.xlu1 }
 0x5b7   :  { %598 = vst.msk [vmem:[#allocation2 + $0x40] sm:$0xff] %vm589_vm3, %v581_v27 }
 0x5ba   :  { %v582_v28 = vpop.trf.xlu1 }
 0x5bb   :  { %599 = vst.msk [vmem:[#allocation2 + $0x48] sm:$0xff] %vm589_vm3, %v582_v28 }
 0x5be   :  { %v583_v29 = vpop.trf.xlu1 }
 0x5bf   :  { %600 = vst.msk [vmem:[#allocation2 + $0x50] sm:$0xff] %vm589_vm3, %v583_v29 }
 0x5c2   :  { %v584_v30 = vpop.trf.xlu1 }
 0x5c3   :  { %601 = vst.msk [vmem:[#allocation2 + $0x58] sm:$0xff] %vm589_vm3, %v584_v30 }
 0x5c6   :  { %v585_v31 = vpop.trf.xlu1 }
 0x5c7   :  { %602 = vst.msk [vmem:[#allocation2 + $0x60] sm:$0xff] %vm589_vm3, %v585_v31 }
 0x5ca   :  { %v586_v32 = vpop.trf.xlu1 }
 0x5cb   :  { %603 = vst.msk [vmem:[#allocation2 + $0x68] sm:$0xff] %vm589_vm3, %v586_v32 }
 0x5ce   :  { %v587_v33 = vpop.trf.xlu1 }
 0x5cf   :  { %604 = vst.msk [vmem:[#allocation2 + $0x70] sm:$0xff] %vm589_vm3, %v587_v33 }
 0x5d2   :  { %v588_v34 = vpop.trf.xlu1 }
 0x5d3   :  { %605 = vst.msk [vmem:[#allocation2 + $0x78] sm:$0xff] %vm589_vm3, %v588_v34 }
 0x5d4   :  { %610 = vsyncadd [#allocation3], 1792  ;;  %s775_s4 = smov [#allocation2]  }
 0x5d5   :  { %s611_s30 = sshll.u32 %s775_s4, 4  ;;  %s612_s30 = int_to_ptr.vmem [resolvable:$true] %s611_s30 }
 0x5d6   :  { %s748_s7 = scalar_lea.vmem %s612_s30, 256  ;;  %s752_s8 = scalar_lea.vmem %s612_s30, 2048 }
 0x5d7   :  { %p749_p0 = scmp.ne.s32.totalorder %s612_s30, %s748_s7  ;;  %p753_p1 = scmp.lt.s32.totalorder %s612_s30, %s612_s30 }
 0x5d8   :  { %p754_p2 = scmp.lt.s32.totalorder %s752_s8, %s748_s7 }
 0x5da   :  { %p755_p3 = por %p754_p2, %p753_p1 }
 0x5dc   :  { %p756_p4 = pnand %p755_p3, %p749_p0 }
 0x5de   :  { %759 = shalt.err (!%p756_p4)
}
 0x5df   :  { %s760_s0 = scalar_lea.hbm %s997_s6, 256 }
 0x5e0   :  { %p761_p5 = scmp.ne.s32.totalorder %s997_s6, %s760_s0  ;;  %p764_p6 = scmp.lt.u32.totalorder %s760_s0, %s997_s6 }
 0x5e2   :  { %p766_p7 = pnand %p764_p6, %p761_p5 }
 0x5e4   :  { %769 = shalt.err (!%p766_p7)
}
 0x5e5   :  { %s776_s15 = smov 128   ;;  %s777_s16 = smov 8  }
 0x5e6   :  { %617 = dma.vmem_to_hbm [thread:$0]  %s612_s30, 256, %s997_s6, [#allocation3], %s776_s15, %s776_s15, %s777_s16  }
 0x5e7   :  { %770 = dma.done.wait [#allocation3], 2048  }
 0x5e8   :  { %771 = vsyncadd [#allocation3], 4294965248 }
 0x5e9   :  { %621 = vsyncpa [#allocation3], 1 }

</bundles_post_ra>
